<compile_context>
chip_gen: v6e
topology: v6e:2x2x1
jax: 0.10.0
libtpu: 0.0.40
codegen_flags: <defaults>
</compile_context>

<pallas_src>
import functools

import jax
import jax.numpy as jnp
from jax.experimental import pallas as pl
from jax.experimental.pallas import tpu as pltpu

CONV_SIZE = 100
C_PAD = 128          # channel axis padded to one full lane width
BN_EPS = 1e-5
LANE = 128


def _round_up(n, m):
    return (n + m - 1) // m * m


def _bn_lrelu(y, gamma, beta):
    """Training-mode BatchNorm2d (batch stats, biased var) fused with LeakyReLU(0.2)."""
    mean = jnp.mean(y, axis=0, keepdims=True)
    centered = y - mean
    var = jnp.mean(centered * centered, axis=0, keepdims=True)   # biased, two-pass
    scale = gamma * jax.lax.rsqrt(var + BN_EPS)                  # (1, C_PAD)
    y = centered * scale + beta                                  # fused scale/shift
    return jnp.where(y >= 0, y, 0.2 * y)


def _fused_kernel(B, S,
                  x_ref, w1_ref, g1_ref, be1_ref, w2_ref, g2_ref, be2_ref,
                  wn_ref, bn_ref, wh_ref, bh_ref, out_ref, y_sc, z_sc):
    k = pl.program_id(0)

    # ---- one-time conv1/BN/conv2/BN into the persistent activation scratch ----
    @pl.when(k == 0)
    def _():
        x = x_ref[...]                                                   # (B*S, F) f32
        # conv bias dropped: cancelled exactly by the BN mean subtraction (training mode)
        y = jnp.dot(x, w1_ref[...], preferred_element_type=jnp.float32)  # (B*S, C_PAD)
        y = _bn_lrelu(y, g1_ref[...], be1_ref[...])
        y = jnp.dot(y, w2_ref[...], preferred_element_type=jnp.float32)  # (B*S, C_PAD)
        y = _bn_lrelu(y, g2_ref[...], be2_ref[...])
        # rows are batch-major (b*S + s): reshaping to (B, S*C_PAD) gives K index
        # s*C_PAD + c, matching the 2-D packed wn (flatten folded at pack time).
        y_sc[...] = y.reshape(B, S * C_PAD).astype(y_sc.dtype)           # bf16 scratch
        z_sc[...] = jnp.zeros_like(z_sc)

    # ---- streamed big Linear: one K-chunk matmul per grid step ----
    chunk_k = wn_ref.shape[0]                                  # multiple of 128 (and 256 when even samples/chunk)
    start = pl.multiple_of(k * chunk_k, LANE)
    y_chunk = y_sc[:, pl.ds(start, chunk_k)]                   # (B, chunk_k) bf16, lane-aligned
    z_sc[...] += jnp.dot(y_chunk, wn_ref[...], preferred_element_type=jnp.float32)

    # ---- finalize: sigmoid + merged mu|var head ----
    @pl.when(k == pl.num_programs(0) - 1)
    def _():
        z = jax.nn.sigmoid(z_sc[...] + bn_ref[...])            # (B, H_PAD) f32
        out_ref[...] = (jnp.dot(z, wh_ref[...], preferred_element_type=jnp.float32)
                        + bh_ref[...])


def pack_params(params, samples, latent_size):
    """One-time host/trace-time repacking of raw (PyTorch-layout) params into padded,
    lane-dense, flatten-permuted kernel weights (wn cast to bf16)."""
    hidden_2 = params["wn"].shape[1]
    h_pad = _round_up(hidden_2, LANE)
    out_pad = _round_up(2 * latent_size, LANE)
    cpad = C_PAD - CONV_SIZE

    w1 = jnp.pad(params["w1"], ((0, 0), (0, cpad)))
    g1 = jnp.pad(params["g1"], ((0, 0), (0, cpad)))
    be1 = jnp.pad(params["be1"], ((0, 0), (0, cpad)))
    w2 = jnp.pad(params["w2"], ((0, cpad), (0, cpad)))
    g2 = jnp.pad(params["g2"], ((0, 0), (0, cpad)))
    be2 = jnp.pad(params["be2"], ((0, 0), (0, cpad)))
    # conv biases b1/b2 intentionally NOT packed: batch-stat BN cancels them exactly.
    # TODO(synk): if eval-mode BatchNorm (running stats) is ever needed, b1/b2 must be re-added.

    # PyTorch flatten(start_dim=1) of (B, C, S, 1) indexes rows channel-major (c*S + s).
    # Re-pack wn rows to the kernel's K order s*C_PAD + c and flatten to 2-D so the
    # whole Linear is ONE K = S*128 matmul; zero-pad c and h; cast to bf16.
    wn = params["wn"].reshape(CONV_SIZE, samples, hidden_2)           # [c, s, h]
    wn = jnp.transpose(wn, (1, 0, 2))                                  # [s, c, h]
    wn = jnp.pad(wn, ((0, 0), (0, cpad), (0, h_pad - hidden_2)))
    wn = wn.reshape(samples * C_PAD, h_pad).astype(jnp.bfloat16)       # (S*128, H_PAD)
    bn = jnp.pad(params["bn"], ((0, 0), (0, h_pad - hidden_2)))

    wh = jnp.concatenate([params["wmu"], params["wv"]], axis=1)        # (hidden_2, 2L)
    wh = jnp.pad(wh, ((0, h_pad - hidden_2), (0, out_pad - 2 * latent_size)))
    bh = jnp.concatenate([params["bmu"], params["bv"]], axis=1)
    bh = jnp.pad(bh, ((0, 0), (0, out_pad - 2 * latent_size)))

    return dict(w1=w1, g1=g1, be1=be1, w2=w2, g2=g2, be2=be2,
                wn=wn, bn=bn, wh=wh, bh=bh)


def _pick_chunk_samples(samples, h_pad, itemsize, target_bytes=4 << 20):
    """Largest divisor of `samples` whose wn chunk fits target_bytes, preferring an even
    count so K per step is a multiple of 256 (full 2x256 MXU depth on v6e/v7x)."""
    divs = [d for d in range(1, samples + 1) if samples % d == 0]
    fit = [d for d in divs if d * C_PAD * h_pad * itemsize <= target_bytes] or [1]
    even = [d for d in fit if d % 2 == 0]
    return max(even) if even else max(fit)


@functools.partial(jax.jit, static_argnames=("latent_size", "chunk_samples"))
def autoencoder_in_forward(x, packed, latent_size, chunk_samples=None):
    """x: (B, samples, features) -> (lat_mu, lat_var), each (B, latent_size)."""
    B, S, F = x.shape
    x2d = x.reshape(B * S, F).astype(jnp.float32)     # batch-major rows; free reshape

    wn = packed["wn"]
    h_pad = packed["wh"].shape[0]
    out_pad = packed["wh"].shape[1]

    if chunk_samples is None:
        chunk_samples = _pick_chunk_samples(S, h_pad, wn.dtype.itemsize)
    if S % chunk_samples != 0:
        raise ValueError("chunk_samples must divide samples")
    chunk_k = chunk_samples * C_PAD
    n_chunks = S // chunk_samples

    args = (x2d, packed["w1"], packed["g1"], packed["be1"],
            packed["w2"], packed["g2"], packed["be2"],
            wn, packed["bn"], packed["wh"], packed["bh"])

    def const_spec(a):
        nd = a.ndim
        return pl.BlockSpec(a.shape, lambda k, _nd=nd: (0,) * _nd)

    in_specs = [const_spec(a) for a in args]
    in_specs[7] = pl.BlockSpec((chunk_k, h_pad), lambda k: (k, 0))     # streamed wn

    # VMEM budget estimate: double-buffered inputs/output + resident scratch.
    def nbytes(a):
        return a.size * a.dtype.itemsize
    wn_chunk_bytes = chunk_k * h_pad * wn.dtype.itemsize
    resident_in_bytes = sum(nbytes(a) for a in args) - nbytes(wn)
    y_bytes = B * S * C_PAD * 2                       # bf16 activation scratch
    z_bytes = B * h_pad * 4
    out_bytes = B * out_pad * 4
    est = 2 * (resident_in_bytes + wn_chunk_bytes + out_bytes) + y_bytes + z_bytes
    cp_kwargs = dict(dimension_semantics=("arbitrary",))
    if est > 12 * (1 << 20):                          # v5e scoped default is only 16 MiB
        cp_kwargs["vmem_limit_bytes"] = min(int(est * 1.5), 64 * (1 << 20))  # v7x physical cap

    out = pl.pallas_call(
        functools.partial(_fused_kernel, B, S),
        out_shape=jax.ShapeDtypeStruct((B, out_pad), jnp.float32),
        grid=(n_chunks,),
        in_specs=in_specs,
        out_specs=pl.BlockSpec((B, out_pad), lambda k: (0, 0)),
        scratch_shapes=[pltpu.VMEM((B, S * C_PAD), jnp.bfloat16),   # persistent conv output
                        pltpu.VMEM((B, h_pad), jnp.float32)],       # z accumulator
        compiler_params=pltpu.CompilerParams(**cp_kwargs),
    )(*args)

    return out[:, :latent_size], out[:, latent_size:2 * latent_size]


def init_params(key, samples, features, latent_size):
    in_linear = samples * CONV_SIZE
    hidden_2 = int(in_linear - 3 * (in_linear - latent_size) / 4)
    ks = jax.random.split(key, 14)
    u = lambda k, shp, s=0.1: (jax.random.uniform(k, shp, jnp.float32) - 0.5) * 2 * s
    params = dict(
        # conv1: Conv2d(1, 100, (1, F)) weight (100,1,1,F) stored transposed as (F, 100)
        w1=u(ks[0], (features, CONV_SIZE)),
        b1=u(ks[1], (1, CONV_SIZE)),
        g1=1.0 + u(ks[2], (1, CONV_SIZE)),
        be1=u(ks[3], (1, CONV_SIZE)),
        # conv2: Conv2d(100, 100, 1x1) stored transposed as (100, 100)
        w2=u(ks[4], (CONV_SIZE, CONV_SIZE)),
        b2=u(ks[5], (1, CONV_SIZE)),
        g2=1.0 + u(ks[6], (1, CONV_SIZE)),
        be2=u(ks[7], (1, CONV_SIZE)),
        # net: Linear(in_linear, hidden_2) + Sigmoid  (rows are channel-major c*S+s)
        wn=u(ks[8], (in_linear, hidden_2)),
        bn=u(ks[9], (1, hidden_2)),
        # mu / var heads
        wmu=u(ks[10], (hidden_2, latent_size)),
        bmu=u(ks[11], (1, latent_size)),
        wv=u(ks[12], (hidden_2, latent_size)),
        bv=u(ks[13], (1, latent_size)),
    )
    return params, hidden_2


def reference_forward(x, params):
    """Pure-JAX f32 reference mirroring the PyTorch module exactly (biases included)."""
    B, S, F = x.shape
    x2d = x.reshape(B * S, F).astype(jnp.float32)

    def bn_lrelu(y, g, be):
        m = jnp.mean(y, axis=0, keepdims=True)
        v = jnp.mean((y - m) ** 2, axis=0, keepdims=True)
        y = (y - m) / jnp.sqrt(v + BN_EPS) * g + be
        return jnp.where(y >= 0, y, 0.2 * y)

    y = x2d @ params["w1"] + params["b1"]
    y = bn_lrelu(y, params["g1"], params["be1"])
    y = y @ params["w2"] + params["b2"]
    y = bn_lrelu(y, params["g2"], params["be2"])
    # PyTorch flatten(start_dim=1) on (B, C, S, 1): channel-major (c*S + s)
    flat = y.reshape(B, S, CONV_SIZE).transpose(0, 2, 1).reshape(B, CONV_SIZE * S)
    z = jax.nn.sigmoid(flat @ params["wn"] + params["bn"])
    return z @ params["wmu"] + params["bmu"], z @ params["wv"] + params["bv"]


if __name__ == "__main__":
    B, SAMPLES, FEATURES, LATENT = 2, 8, 16, 32
    key = jax.random.PRNGKey(0)
    kx, kp = jax.random.split(key)

    x = jax.random.normal(kx, (B, SAMPLES, FEATURES), jnp.float32)
    params, hidden_2 = init_params(kp, SAMPLES, FEATURES, LATENT)
    packed = pack_params(params, SAMPLES, LATENT)       # one-time weight repack

    ref_mu, ref_var = reference_forward(x, params)

    # 1) auto-picked chunk (fully resident at this toy size -> grid=(1,))
    lat_mu, lat_var = autoencoder_in_forward(x, packed, LATENT)
    jax.block_until_ready((lat_mu, lat_var))
    assert lat_mu.shape == (B, LATENT) and lat_var.shape == (B, LATENT)
    assert jnp.allclose(lat_mu, ref_mu, atol=1e-2, rtol=1e-2)   # bf16 wn/activation tolerance
    assert jnp.allclose(lat_var, ref_var, atol=1e-2, rtol=1e-2)

    # 2) forced multi-chunk streaming path (exercises pl.when init/finalize + accumulator)
    lat_mu2, lat_var2 = autoencoder_in_forward(x, packed, LATENT, chunk_samples=2)
    jax.block_until_ready((lat_mu2, lat_var2))
    assert jnp.allclose(lat_mu2, ref_mu, atol=1e-2, rtol=1e-2)
    assert jnp.allclose(lat_var2, ref_var, atol=1e-2, rtol=1e-2)

    print("KERNEL_OK")
</pallas_src>

<mosaic_0001>
module attributes {stable_mosaic.version = 11 : i64} {
  func.func @_fused_kernel(%arg0: i32, %arg1: memref<16x16xf32, #tpu.memory_space<vmem>>, %arg2: memref<16x128xf32, #tpu.memory_space<vmem>>, %arg3: memref<1x128xf32, #tpu.memory_space<vmem>>, %arg4: memref<1x128xf32, #tpu.memory_space<vmem>>, %arg5: memref<128x128xf32, #tpu.memory_space<vmem>>, %arg6: memref<1x128xf32, #tpu.memory_space<vmem>>, %arg7: memref<1x128xf32, #tpu.memory_space<vmem>>, %arg8: memref<1024x256xbf16, #tpu.memory_space<vmem>>, %arg9: memref<1x256xf32, #tpu.memory_space<vmem>>, %arg10: memref<256x128xf32, #tpu.memory_space<vmem>>, %arg11: memref<1x128xf32, #tpu.memory_space<vmem>>, %arg12: memref<2x128xf32, #tpu.memory_space<vmem>>, %arg13: memref<2x1024xbf16, #tpu.memory_space<vmem>>, %arg14: memref<2x256xf32, #tpu.memory_space<vmem>>) attributes {dimension_semantics = [#tpu.dimension_semantics<arbitrary>], iteration_bounds = array<i64: 1>, scalar_prefetch = 0 : i64, scratch_operands = 2 : i64, tpu.core_type = #tpu.core_type<tc>, window_params = [{pipeline_mode = #tpu.pipeline_mode<synchronous>, transform_indices = @transform_0, window_bounds = array<i64: 16, 16>}, {pipeline_mode = #tpu.pipeline_mode<synchronous>, transform_indices = @transform_1, window_bounds = array<i64: 16, 128>}, {pipeline_mode = #tpu.pipeline_mode<synchronous>, transform_indices = @transform_2, window_bounds = array<i64: 1, 128>}, {pipeline_mode = #tpu.pipeline_mode<synchronous>, transform_indices = @transform_3, window_bounds = array<i64: 1, 128>}, {pipeline_mode = #tpu.pipeline_mode<synchronous>, transform_indices = @transform_4, window_bounds = array<i64: 128, 128>}, {pipeline_mode = #tpu.pipeline_mode<synchronous>, transform_indices = @transform_5, window_bounds = array<i64: 1, 128>}, {pipeline_mode = #tpu.pipeline_mode<synchronous>, transform_indices = @transform_6, window_bounds = array<i64: 1, 128>}, {transform_indices = @transform_7, window_bounds = array<i64: 1024, 256>}, {pipeline_mode = #tpu.pipeline_mode<synchronous>, transform_indices = @transform_8, window_bounds = array<i64: 1, 256>}, {pipeline_mode = #tpu.pipeline_mode<synchronous>, transform_indices = @transform_9, window_bounds = array<i64: 256, 128>}, {pipeline_mode = #tpu.pipeline_mode<synchronous>, transform_indices = @transform_10, window_bounds = array<i64: 1, 128>}, {pipeline_mode = #tpu.pipeline_mode<synchronous>, transform_indices = @transform_11, window_bounds = array<i64: 2, 128>}]} {
    %c0_i32 = arith.constant 0 : i32
    %0 = arith.cmpi eq, %arg0, %c0_i32 : i32
    %1 = arith.extui %0 : i1 to i32
    %c0_i32_0 = arith.constant 0 : i32
    %2 = arith.cmpi ne, %1, %c0_i32_0 : i32
    scf.if %2 {
      %c0_9 = arith.constant 0 : index
      %c0_10 = arith.constant 0 : index
      %15 = vector.load %arg1[%c0_9, %c0_10] : memref<16x16xf32, #tpu.memory_space<vmem>>, vector<16x16xf32>
      %c0_11 = arith.constant 0 : index
      %c0_12 = arith.constant 0 : index
      %16 = vector.load %arg2[%c0_11, %c0_12] : memref<16x128xf32, #tpu.memory_space<vmem>>, vector<16x128xf32>
      %cst_13 = arith.constant dense<0.000000e+00> : vector<16x128xf32>
      %17 = tpu.matmul %15, %16, %cst_13 {dimension_numbers = #tpu.dot_dimension_numbers<[1], [0], [0], [1], [0, 0, 1, 1], [], []>} : vector<16x16xf32>, vector<16x128xf32>, vector<16x128xf32> -> vector<16x128xf32>
      %c0_14 = arith.constant 0 : index
      %c0_15 = arith.constant 0 : index
      %18 = vector.load %arg3[%c0_14, %c0_15] : memref<1x128xf32, #tpu.memory_space<vmem>>, vector<1x128xf32>
      %c0_16 = arith.constant 0 : index
      %c0_17 = arith.constant 0 : index
      %19 = vector.load %arg4[%c0_16, %c0_17] : memref<1x128xf32, #tpu.memory_space<vmem>>, vector<1x128xf32>
      %cst_18 = arith.constant dense<0.000000e+00> : vector<128xf32>
      %20 = vector.multi_reduction <add>, %17, %cst_18 [0] : vector<16x128xf32> to vector<128xf32>
      %21 = vector.shape_cast %20 : vector<128xf32> to vector<1x128xf32>
      %cst_19 = arith.constant 1.600000e+01 : f32
      %22 = vector.broadcast %cst_19 : f32 to vector<1x128xf32>
      %23 = arith.divf %21, %22 : vector<1x128xf32>
      %24 = vector.broadcast %23 : vector<1x128xf32> to vector<16x128xf32>
      %25 = arith.subf %17, %24 : vector<16x128xf32>
      %26 = arith.mulf %25, %25 : vector<16x128xf32>
      %cst_20 = arith.constant dense<0.000000e+00> : vector<128xf32>
      %27 = vector.multi_reduction <add>, %26, %cst_20 [0] : vector<16x128xf32> to vector<128xf32>
      %28 = vector.shape_cast %27 : vector<128xf32> to vector<1x128xf32>
      %cst_21 = arith.constant 1.600000e+01 : f32
      %29 = vector.broadcast %cst_21 : f32 to vector<1x128xf32>
      %30 = arith.divf %28, %29 : vector<1x128xf32>
      %cst_22 = arith.constant 9.99999974E-6 : f32
      %31 = vector.broadcast %cst_22 : f32 to vector<1x128xf32>
      %32 = arith.addf %30, %31 : vector<1x128xf32>
      %33 = math.rsqrt %32 : vector<1x128xf32>
      %34 = arith.mulf %18, %33 : vector<1x128xf32>
      %35 = vector.broadcast %34 : vector<1x128xf32> to vector<16x128xf32>
      %36 = arith.mulf %25, %35 : vector<16x128xf32>
      %37 = vector.broadcast %19 : vector<1x128xf32> to vector<16x128xf32>
      %38 = arith.addf %36, %37 : vector<16x128xf32>
      %cst_23 = arith.constant 0.000000e+00 : f32
      %39 = vector.broadcast %cst_23 : f32 to vector<16x128xf32>
      %40 = arith.cmpf oge, %38, %39 : vector<16x128xf32>
      %cst_24 = arith.constant 2.000000e-01 : f32
      %41 = vector.broadcast %cst_24 : f32 to vector<16x128xf32>
      %42 = arith.mulf %41, %38 : vector<16x128xf32>
      %43 = arith.select %40, %38, %42 : vector<16x128xi1>, vector<16x128xf32>
      %c0_25 = arith.constant 0 : index
      %c0_26 = arith.constant 0 : index
      %44 = vector.load %arg5[%c0_25, %c0_26] : memref<128x128xf32, #tpu.memory_space<vmem>>, vector<128x128xf32>
      %cst_27 = arith.constant dense<0.000000e+00> : vector<16x128xf32>
      %45 = tpu.matmul %43, %44, %cst_27 {dimension_numbers = #tpu.dot_dimension_numbers<[1], [0], [0], [1], [0, 0, 1, 1], [], []>} : vector<16x128xf32>, vector<128x128xf32>, vector<16x128xf32> -> vector<16x128xf32>
      %c0_28 = arith.constant 0 : index
      %c0_29 = arith.constant 0 : index
      %46 = vector.load %arg6[%c0_28, %c0_29] : memref<1x128xf32, #tpu.memory_space<vmem>>, vector<1x128xf32>
      %c0_30 = arith.constant 0 : index
      %c0_31 = arith.constant 0 : index
      %47 = vector.load %arg7[%c0_30, %c0_31] : memref<1x128xf32, #tpu.memory_space<vmem>>, vector<1x128xf32>
      %cst_32 = arith.constant dense<0.000000e+00> : vector<128xf32>
      %48 = vector.multi_reduction <add>, %45, %cst_32 [0] : vector<16x128xf32> to vector<128xf32>
      %49 = vector.shape_cast %48 : vector<128xf32> to vector<1x128xf32>
      %cst_33 = arith.constant 1.600000e+01 : f32
      %50 = vector.broadcast %cst_33 : f32 to vector<1x128xf32>
      %51 = arith.divf %49, %50 : vector<1x128xf32>
      %52 = vector.broadcast %51 : vector<1x128xf32> to vector<16x128xf32>
      %53 = arith.subf %45, %52 : vector<16x128xf32>
      %54 = arith.mulf %53, %53 : vector<16x128xf32>
      %cst_34 = arith.constant dense<0.000000e+00> : vector<128xf32>
      %55 = vector.multi_reduction <add>, %54, %cst_34 [0] : vector<16x128xf32> to vector<128xf32>
      %56 = vector.shape_cast %55 : vector<128xf32> to vector<1x128xf32>
      %cst_35 = arith.constant 1.600000e+01 : f32
      %57 = vector.broadcast %cst_35 : f32 to vector<1x128xf32>
      %58 = arith.divf %56, %57 : vector<1x128xf32>
      %cst_36 = arith.constant 9.99999974E-6 : f32
      %59 = vector.broadcast %cst_36 : f32 to vector<1x128xf32>
      %60 = arith.addf %58, %59 : vector<1x128xf32>
      %61 = math.rsqrt %60 : vector<1x128xf32>
      %62 = arith.mulf %46, %61 : vector<1x128xf32>
      %63 = vector.broadcast %62 : vector<1x128xf32> to vector<16x128xf32>
      %64 = arith.mulf %53, %63 : vector<16x128xf32>
      %65 = vector.broadcast %47 : vector<1x128xf32> to vector<16x128xf32>
      %66 = arith.addf %64, %65 : vector<16x128xf32>
      %cst_37 = arith.constant 0.000000e+00 : f32
      %67 = vector.broadcast %cst_37 : f32 to vector<16x128xf32>
      %68 = arith.cmpf oge, %66, %67 : vector<16x128xf32>
      %cst_38 = arith.constant 2.000000e-01 : f32
      %69 = vector.broadcast %cst_38 : f32 to vector<16x128xf32>
      %70 = arith.mulf %69, %66 : vector<16x128xf32>
      %71 = arith.select %68, %66, %70 : vector<16x128xi1>, vector<16x128xf32>
      %72 = vector.shape_cast %71 : vector<16x128xf32> to vector<2x1024xf32>
      %73 = arith.truncf %72 : vector<2x1024xf32> to vector<2x1024xbf16>
      %c0_39 = arith.constant 0 : index
      %c0_40 = arith.constant 0 : index
      %74 = vector.load %arg13[%c0_39, %c0_40] : memref<2x1024xbf16, #tpu.memory_space<vmem>>, vector<2x1024xbf16>
      tpu.vector_store %arg13[%c0_39, %c0_40], %73 {strides = array<i32>} : memref<2x1024xbf16, #tpu.memory_space<vmem>>, vector<2x1024xbf16>,
      %cst_41 = arith.constant 0.000000e+00 : f32
      %75 = vector.broadcast %cst_41 : f32 to vector<2x256xf32>
      %c0_42 = arith.constant 0 : index
      %c0_43 = arith.constant 0 : index
      %76 = vector.load %arg14[%c0_42, %c0_43] : memref<2x256xf32, #tpu.memory_space<vmem>>, vector<2x256xf32>
      tpu.vector_store %arg14[%c0_42, %c0_43], %75 {strides = array<i32>} : memref<2x256xf32, #tpu.memory_space<vmem>>, vector<2x256xf32>,
    } else {
    }
    %c1024_i32 = arith.constant 1024 : i32
    %3 = arith.muli %arg0, %c1024_i32 : i32
    %4 = tpu.assume_multiple %3, 128 : i32
    %c0 = arith.constant 0 : index
    %5 = arith.index_cast %4 : i32 to index
    %6 = vector.load %arg13[%c0, %5] : memref<2x1024xbf16, #tpu.memory_space<vmem>>, vector<2x1024xbf16>
    %c0_1 = arith.constant 0 : index
    %c0_2 = arith.constant 0 : index
    %7 = vector.load %arg14[%c0_1, %c0_2] : memref<2x256xf32, #tpu.memory_space<vmem>>, vector<2x256xf32>
    %c0_3 = arith.constant 0 : index
    %c0_4 = arith.constant 0 : index
    %8 = vector.load %arg8[%c0_3, %c0_4] : memref<1024x256xbf16, #tpu.memory_space<vmem>>, vector<1024x256xbf16>
    %cst = arith.constant dense<0.000000e+00> : vector<2x256xf32>
    %9 = tpu.matmul %6, %8, %cst {dimension_numbers = #tpu.dot_dimension_numbers<[1], [0], [0], [1], [0, 0, 1, 1], [], []>} : vector<2x1024xbf16>, vector<1024x256xbf16>, vector<2x256xf32> -> vector<2x256xf32>
    %10 = arith.addf %7, %9 : vector<2x256xf32>
    %c0_5 = arith.constant 0 : index
    %c0_6 = arith.constant 0 : index
    %11 = vector.load %arg14[%c0_5, %c0_6] : memref<2x256xf32, #tpu.memory_space<vmem>>, vector<2x256xf32>
    tpu.vector_store %arg14[%c0_5, %c0_6], %10 {strides = array<i32>} : memref<2x256xf32, #tpu.memory_space<vmem>>, vector<2x256xf32>,
    %c0_i32_7 = arith.constant 0 : i32
    %12 = arith.cmpi eq, %arg0, %c0_i32_7 : i32
    %13 = arith.extui %12 : i1 to i32
    %c0_i32_8 = arith.constant 0 : i32
    %14 = arith.cmpi ne, %13, %c0_i32_8 : i32
    scf.if %14 {
      %c0_9 = arith.constant 0 : index
      %c0_10 = arith.constant 0 : index
      %15 = vector.load %arg14[%c0_9, %c0_10] : memref<2x256xf32, #tpu.memory_space<vmem>>, vector<2x256xf32>
      %c0_11 = arith.constant 0 : index
      %c0_12 = arith.constant 0 : index
      %16 = vector.load %arg9[%c0_11, %c0_12] : memref<1x256xf32, #tpu.memory_space<vmem>>, vector<1x256xf32>
      %17 = vector.broadcast %16 : vector<1x256xf32> to vector<2x256xf32>
      %18 = arith.addf %15, %17 : vector<2x256xf32>
      %19 = arith.negf %18 : vector<2x256xf32>
      %20 = math.exp %19 : vector<2x256xf32>
      %cst_13 = arith.constant 1.000000e+00 : f32
      %21 = vector.broadcast %cst_13 : f32 to vector<2x256xf32>
      %22 = arith.addf %21, %20 : vector<2x256xf32>
      %23 = arith.divf %21, %22 : vector<2x256xf32>
      %c0_14 = arith.constant 0 : index
      %c0_15 = arith.constant 0 : index
      %24 = vector.load %arg10[%c0_14, %c0_15] : memref<256x128xf32, #tpu.memory_space<vmem>>, vector<256x128xf32>
      %cst_16 = arith.constant dense<0.000000e+00> : vector<2x128xf32>
      %25 = tpu.matmul %23, %24, %cst_16 {dimension_numbers = #tpu.dot_dimension_numbers<[1], [0], [0], [1], [0, 0, 1, 1], [], []>} : vector<2x256xf32>, vector<256x128xf32>, vector<2x128xf32> -> vector<2x128xf32>
      %c0_17 = arith.constant 0 : index
      %c0_18 = arith.constant 0 : index
      %26 = vector.load %arg11[%c0_17, %c0_18] : memref<1x128xf32, #tpu.memory_space<vmem>>, vector<1x128xf32>
      %27 = vector.broadcast %26 : vector<1x128xf32> to vector<2x128xf32>
      %28 = arith.addf %25, %27 : vector<2x128xf32>
      %c0_19 = arith.constant 0 : index
      %c0_20 = arith.constant 0 : index
      %29 = vector.load %arg12[%c0_19, %c0_20] : memref<2x128xf32, #tpu.memory_space<vmem>>, vector<2x128xf32>
      tpu.vector_store %arg12[%c0_19, %c0_20], %28 {strides = array<i32>} : memref<2x128xf32, #tpu.memory_space<vmem>>, vector<2x128xf32>,
    } else {
    }
    return
  }
  func.func @transform_0(%arg0: i32) -> (i32, i32) {
    %c0_i32 = arith.constant 0 : i32
    %c0_i32_0 = arith.constant 0 : i32
    %c0_i32_1 = arith.constant 0 : i32
    return %c0_i32, %c0_i32_0 : i32, i32
  }
  func.func @transform_1(%arg0: i32) -> (i32, i32) {
    %c0_i32 = arith.constant 0 : i32
    %c0_i32_0 = arith.constant 0 : i32
    %c0_i32_1 = arith.constant 0 : i32
    return %c0_i32, %c0_i32_0 : i32, i32
  }
  func.func @transform_2(%arg0: i32) -> (i32, i32) {
    %c0_i32 = arith.constant 0 : i32
    %c0_i32_0 = arith.constant 0 : i32
    %c0_i32_1 = arith.constant 0 : i32
    return %c0_i32, %c0_i32_0 : i32, i32
  }
  func.func @transform_3(%arg0: i32) -> (i32, i32) {
    %c0_i32 = arith.constant 0 : i32
    %c0_i32_0 = arith.constant 0 : i32
    %c0_i32_1 = arith.constant 0 : i32
    return %c0_i32, %c0_i32_0 : i32, i32
  }
  func.func @transform_4(%arg0: i32) -> (i32, i32) {
    %c0_i32 = arith.constant 0 : i32
    %c0_i32_0 = arith.constant 0 : i32
    %c0_i32_1 = arith.constant 0 : i32
    return %c0_i32, %c0_i32_0 : i32, i32
  }
  func.func @transform_5(%arg0: i32) -> (i32, i32) {
    %c0_i32 = arith.constant 0 : i32
    %c0_i32_0 = arith.constant 0 : i32
    %c0_i32_1 = arith.constant 0 : i32
    return %c0_i32, %c0_i32_0 : i32, i32
  }
  func.func @transform_6(%arg0: i32) -> (i32, i32) {
    %c0_i32 = arith.constant 0 : i32
    %c0_i32_0 = arith.constant 0 : i32
    %c0_i32_1 = arith.constant 0 : i32
    return %c0_i32, %c0_i32_0 : i32, i32
  }
  func.func @transform_7(%arg0: i32) -> (i32, i32) {
    %c0_i32 = arith.constant 0 : i32
    %c0_i32_0 = arith.constant 0 : i32
    return %arg0, %c0_i32 : i32, i32
  }
  func.func @transform_8(%arg0: i32) -> (i32, i32) {
    %c0_i32 = arith.constant 0 : i32
    %c0_i32_0 = arith.constant 0 : i32
    %c0_i32_1 = arith.constant 0 : i32
    return %c0_i32, %c0_i32_0 : i32, i32
  }
  func.func @transform_9(%arg0: i32) -> (i32, i32) {
    %c0_i32 = arith.constant 0 : i32
    %c0_i32_0 = arith.constant 0 : i32
    %c0_i32_1 = arith.constant 0 : i32
    return %c0_i32, %c0_i32_0 : i32, i32
  }
  func.func @transform_10(%arg0: i32) -> (i32, i32) {
    %c0_i32 = arith.constant 0 : i32
    %c0_i32_0 = arith.constant 0 : i32
    %c0_i32_1 = arith.constant 0 : i32
    return %c0_i32, %c0_i32_0 : i32, i32
  }
  func.func @transform_11(%arg0: i32) -> (i32, i32) {
    %c0_i32 = arith.constant 0 : i32
    %c0_i32_0 = arith.constant 0 : i32
    %c0_i32_1 = arith.constant 0 : i32
    return %c0_i32, %c0_i32_0 : i32, i32
  }
}

</mosaic_0001>

<bundles_post_ra>
// kernel: autoencoder_in_forward.1
= control target key start
LH: loop header
LB: loop body
LE: loop exit
PB: predicated region body
PF: predicated region fallthrough
CT: control target
= control target key end

     0   :  { %16 = vsyncpa [#allocation5], 0  ;;  %s2406_s0 = inlined_call_operand.hbm [shape: f32[16,16], index: 0, kind: input, shape index: {}]   ;;  %s2407_s1 = inlined_call_operand.hbm [shape: f32[16,128], index: 1, kind: input, shape index: {}]   ;;  %s2408_s2 = inlined_call_operand.vmem [shape: f32[1,128], index: 2, kind: input, shape index: {}]   ;;  %s2409_s3 = inlined_call_operand.hbm [shape: f32[1,128], index: 3, kind: input, shape index: {}]   ;;  %s2410_s4 = inlined_call_operand.hbm [shape: f32[128,128], index: 4, kind: input, shape index: {}]   ;;  %s2411_s5 = inlined_call_operand.vmem [shape: f32[1,128], index: 5, kind: input, shape index: {}]   ;;  %s2412_s6 = inlined_call_operand.vmem [shape: f32[1,128], index: 6, kind: input, shape index: {}]   ;;  %s2413_s7 = inlined_call_operand.hbm [shape: bf16[1024,256], index: 7, kind: input, shape index: {}]   ;;  %s2414_s8 = inlined_call_operand.vmem [shape: f32[1,256], index: 8, kind: input, shape index: {}]   ;;  %s2415_s9 = inlined_call_operand.hbm [shape: f32[256,128], index: 9, kind: input, shape index: {}]   ;;  %s2416_s10 = inlined_call_operand.vmem [shape: f32[1,128], index: 10, kind: input, shape index: {}]   ;;  %s2417_s11 = inlined_call_operand.vmem [shape: f32[2,128], index: 11, kind: output, shape index: {}]  }
   0x1   :  { %17 = vsyncpa [#allocation7], 0 }
   0x2   :  { %18 = vsyncpa [#allocation10], 0 }
   0x3   :  { %19 = vsyncpa [#allocation13], 0  ;;  %s2268_s17 = smov [#allocation6]   ;;  %s2269_s19 = smov [#allocation9]  }
   0x4   :  { %s37_s18 = sshll.u32 %s2268_s17, 4  ;;  %s61_s20 = sshll.u32 %s2269_s19, 4  ;;  %s38_s18 = int_to_ptr.vmem [resolvable:$true] %s37_s18  ;;  %s62_s20 = int_to_ptr.vmem [resolvable:$true] %s61_s20 }
   0x5   :  { %s2148_s21 = scalar_lea.vmem %s38_s18, 256  ;;  %p2153_p1 = scmp.lt.s32.totalorder %s38_s18, %s38_s18 }
   0x6   :  { %p2149_p0 = scmp.ne.s32.totalorder %s38_s18, %s2148_s21  ;;  %p2154_p2 = scmp.lt.s32.totalorder %s2148_s21, %s2148_s21 }
   0x8   :  { %p2155_p3 = por %p2154_p2, %p2153_p1 }
   0xa   :  { %p2156_p4 = pnand %p2155_p3, %p2149_p0 }
   0xc   :  { %2159 = shalt.err (!%p2156_p4)
}
   0xd   :  { %s2270_s22 = smov 128   ;;  %s2271_s23 = smov 8  }
   0xe   :  { %43 = dma.hbm_to_vmem [thread:$0]  %s2407_s1, 256, %s38_s18, [#allocation7], %s2270_s22, %s2270_s22, %s2271_s23  }
   0xf   :  { %s2168_s26 = scalar_lea.vmem %s62_s20, 2048  ;;  %p2173_p6 = scmp.lt.s32.totalorder %s62_s20, %s62_s20 }
  0x10   :  { %p2169_p5 = scmp.ne.s32.totalorder %s62_s20, %s2168_s26  ;;  %p2174_p7 = scmp.lt.s32.totalorder %s2168_s26, %s2168_s26 }
  0x12   :  { %p2175_p8 = por %p2174_p7, %p2173_p6 }
  0x14   :  { %p2176_p9 = pnand %p2175_p8, %p2169_p5 }
  0x16   :  { %2179 = shalt.err (!%p2176_p9)
}
  0x17   :  { %67 = dma.hbm_to_vmem [thread:$0]  %s2410_s4, 2048, %s62_s20, [#allocation10], %s2270_s22, %s2270_s22, %s2271_s23  }
  0x18   :  { %s2272_s29 = smov [#allocation4]   ;;  %s2273_s12 = smov [#allocation8]  }
  0x19   :  { %s25_s30 = sshll.u32 %s2272_s29, 4  ;;  %s52_s13 = sshll.u32 %s2273_s12, 4  ;;  %s26_s30 = int_to_ptr.vmem [resolvable:$true] %s25_s30  ;;  %s53_s13 = int_to_ptr.vmem [resolvable:$true] %s52_s13 }
  0x1a   :  { %s2188_s1 = scalar_lea.vmem %s26_s30, 256  ;;  %p2193_p11 = scmp.lt.s32.totalorder %s26_s30, %s26_s30 }
  0x1b   :  { %p2189_p10 = scmp.ne.s32.totalorder %s26_s30, %s2188_s1  ;;  %p2194_p12 = scmp.lt.s32.totalorder %s2188_s1, %s2188_s1 }
  0x1d   :  { %p2195_p13 = por %p2194_p12, %p2193_p11 }
  0x1f   :  { %p2196_p0 = pnand %p2195_p13, %p2189_p10 }
  0x21   :  { %2199 = shalt.err (!%p2196_p0)
}
  0x22   :  { %31 = dma.hbm_to_vmem [thread:$0]  %s2406_s0, 256, %s26_s30, [#allocation5], %s2270_s22, %s2270_s22, %s2271_s23  }
  0x23   :  { %s2208_s4 = scalar_lea.vmem %s53_s13, 16  ;;  %s2212_s16 = scalar_lea.vmem %s53_s13, 32 }
  0x24   :  { %p2209_p1 = scmp.ne.s32.totalorder %s53_s13, %s2208_s4  ;;  %p2213_p2 = scmp.lt.s32.totalorder %s53_s13, %s53_s13 }
  0x25   :  { %p2214_p3 = scmp.lt.s32.totalorder %s2212_s16, %s2208_s4 }
  0x27   :  { %p2215_p4 = por %p2214_p3, %p2213_p2 }
  0x29   :  { %p2216_p5 = pnand %p2215_p4, %p2209_p1 }
  0x2b   :  { %2219 = shalt.err (!%p2216_p5)
}
  0x2c   :  { %55 = dma.hbm_to_vmem [thread:$0]  %s2409_s3, 16, %s53_s13, [#allocation7]  }
  0x2d   :  { %s2274_s19 = smov [#allocation11]   ;;  %s2275_s21 = smov [#allocation12]  }
  0x2e   :  { %s77_s20 = sshll.u32 %s2274_s19, 4  ;;  %s91_s24 = sshll.u32 %s2275_s21, 4  ;;  %s78_s20 = int_to_ptr.vmem [resolvable:$true] %s77_s20  ;;  %s92_s24 = int_to_ptr.vmem [resolvable:$true] %s91_s24 }
  0x2f   :  { %s2228_s25 = scalar_lea.vmem %s78_s20, 16384  ;;  %p2233_p7 = scmp.lt.s32.totalorder %s78_s20, %s78_s20 }
  0x30   :  { %p2229_p6 = scmp.ne.s32.totalorder %s78_s20, %s2228_s25  ;;  %p2234_p8 = scmp.lt.s32.totalorder %s2228_s25, %s2228_s25 }
  0x32   :  { %p2235_p9 = por %p2234_p8, %p2233_p7 }
  0x34   :  { %p2236_p10 = pnand %p2235_p9, %p2229_p6 }
  0x36   :  { %2239 = shalt.err (!%p2236_p10)
}
  0x37   :  { %83 = dma.hbm_to_vmem [thread:$0]  %s2413_s7, 16384, %s78_s20, [#allocation10], %s2270_s22, %s2270_s22, %s2271_s23  }
  0x38   :  { %s2248_s3 = scalar_lea.vmem %s92_s24, 4096  ;;  %p2253_p12 = scmp.lt.s32.totalorder %s92_s24, %s92_s24 }
  0x39   :  { %p2249_p11 = scmp.ne.s32.totalorder %s92_s24, %s2248_s3  ;;  %p2254_p13 = scmp.lt.s32.totalorder %s2248_s3, %s2248_s3 }
  0x3b   :  { %p2255_p0 = por %p2254_p13, %p2253_p12 }
  0x3d   :  { %p2256_p1 = pnand %p2255_p0, %p2249_p11 }
  0x3f   :  { %2259 = shalt.err (!%p2256_p1)
}
  0x40   :  { %97 = dma.hbm_to_vmem [thread:$0]  %s2415_s9, 4096, %s92_s24, [#allocation13], %s2270_s22, %s2270_s22, %s2271_s23  }
  0x41   :  { %2260 = dma.done.wait [#allocation5], 256  }
  0x42   :  { %2261 = vsyncadd [#allocation5], 4294967040 }
  0x43   :  { %2262 = dma.done.wait [#allocation7], 272  }
  0x44   :  { %2263 = vsyncadd [#allocation7], 4294967024 }
  0x45   :  { %2264 = dma.done.wait [#allocation10], 18432  }
  0x46   :  { %2265 = vsyncadd [#allocation10], 4294948864 }
  0x47   :  { %2266 = dma.done.wait [#allocation13], 4096  }
  0x48   :  { %2267 = vsyncadd [#allocation13], 4294963200  ;;  %vm126_vm0 = vcmask 130048   ;;  %v125_v0 = vld [vmem:[#allocation6 + $0x8] sm:$0xff]  ;;  %v124_v1 = vld [vmem:[#allocation6] sm:$0xff]  ;;  %v235_v43 = vlaneseq }
  0x49   :  { %v122_v2 = vld [vmem:[#allocation4] sm:$0xff]  ;;  %1887 = vmatprep.subr.mxu0 %v125_v0  ;;  %v123_v3 = vld [vmem:[#allocation4 + $0x8] sm:$0xff]  ;;  %v270_v5 = vld [vmem:[#allocation9 + $0x70] sm:$0xff] }
  0x4a   :  { %1891 = vmatprep.mubr.msk.f32.mxu0 %vm126_vm0, %v122_v2  ;;  %1888 = vmatpush3.msra.mxu0 %v125_v0  ;;  %v271_v4 = vld [vmem:[#allocation9 + $0x78] sm:$0xff]  ;;  %v269_v6 = vld [vmem:[#allocation9 + $0x68] sm:$0xff]  ;;  %v268_v7 = vld [vmem:[#allocation9 + $0x60] sm:$0xff]  ;;  %v2372_v44 = vshrl.u32 %v235_v43, 7 }
  0x4b   :  { %1889 = vmatprep.subr.mxu0 %v124_v1  ;;  %1894 = vmatprep.subr.mxu1 %v271_v4  ;;  %v267_v8 = vld [vmem:[#allocation9 + $0x58] sm:$0xff]  ;;  %v266_v9 = vld [vmem:[#allocation9 + $0x50] sm:$0xff]  ;;  %v265_v10 = vld [vmem:[#allocation9 + $0x48] sm:$0xff] }
  0x4c   :  { %1890 = vmatpush3.msra.mxu0 %v124_v1  ;;  %1895 = vmatpush3.msra.mxu1 %v271_v4  ;;  %v264_v11 = vld [vmem:[#allocation9 + $0x40] sm:$0xff]  ;;  %v263_v12 = vld [vmem:[#allocation9 + $0x38] sm:$0xff]  ;;  %v262_v13 = vld [vmem:[#allocation9 + $0x30] sm:$0xff]  ;;  %v2378_v46 = vsub.s32 0, %v2372_v44 }
  0x4d   :  { %1892 = vmatmul.mubr.msk.f32.vlgmr.msra.gmra.mxu0 %vm126_vm0, %v123_v3  ;;  %1896 = vmatprep.subr.mxu1 %v270_v5  ;;  %v261_v14 = vld [vmem:[#allocation9 + $0x28] sm:$0xff]  ;;  %v260_v15 = vld [vmem:[#allocation9 + $0x20] sm:$0xff]  ;;  %v259_v16 = vld [vmem:[#allocation9 + $0x18] sm:$0xff] }
  0x4e   :  { %1897 = vmatpush3.msra.mxu1 %v270_v5  ;;  %v258_v17 = vld [vmem:[#allocation9 + $0x10] sm:$0xff]  ;;  %v257_v18 = vld [vmem:[#allocation9 + $0x8] sm:$0xff]  ;;  %v256_v19 = vld [vmem:[#allocation9] sm:$0xff] }
  0x4f   :  { %1898 = vmatprep.subr.mxu1 %v269_v6  ;;  %v208_v45 = vld [vmem:[%s2408_s2] sm:$0x1]  ;;  %v1693_v50 = vld [vmem:[#allocation8] ss:$0 sm:$0xff]  ;;  %v1948_v63 = vld [vmem:[#allocation11 + $0x64] ss:$8 sps:$4 sm:$0xff]  }
  0x50   :  { %1899 = vmatpush3.msra.mxu1 %v269_v6  ;;  %v1942_v59 = vld [vmem:[#allocation11 + $0x74] ss:$8 sps:$4 sm:$0xff]   ;;  %v1940_v60 = vld [vmem:[#allocation11 + $0x70] ss:$8 sps:$4 sm:$0xff]   ;;  %v1946_v0 = vld [vmem:[#allocation11 + $0x60] ss:$8 sps:$4 sm:$0xff]  }
  0x51   :  { %1900 = vmatprep.subr.mxu1 %v268_v7  ;;  %1354 = vmatprep.subr.bf16.mxu0 %v1942_v59  ;;  %v1945_v61 = vld [vmem:[#allocation11 + $0x174] ss:$8 sps:$4 sm:$0xff]   ;;  %v1943_v62 = vld [vmem:[#allocation11 + $0x170] ss:$8 sps:$4 sm:$0xff]   ;;  %v1951_v1 = vld [vmem:[#allocation11 + $0x164] ss:$8 sps:$4 sm:$0xff]  }
  0x52   :  { %1901 = vmatpush3.msra.mxu1 %v268_v7  ;;  %1355 = vmatpush1.bf16.msra.mxu0 %v1940_v60  ;;  %v1949_v2 = vld [vmem:[#allocation11 + $0x160] ss:$8 sps:$4 sm:$0xff]   ;;  %v1954_v3 = vld [vmem:[#allocation11 + $0x54] ss:$8 sps:$4 sm:$0xff]   ;;  %v1952_v4 = vld [vmem:[#allocation11 + $0x50] ss:$8 sps:$4 sm:$0xff]  }
  0x53   :  { %1902 = vmatprep.subr.mxu1 %v267_v8  ;;  %1356 = vmatprep.subr.bf16.mxu0 %v1948_v63  ;;  %v1957_v5 = vld [vmem:[#allocation11 + $0x154] ss:$8 sps:$4 sm:$0xff]   ;;  %v1955_v6 = vld [vmem:[#allocation11 + $0x150] ss:$8 sps:$4 sm:$0xff]   ;;  %v1960_v7 = vld [vmem:[#allocation11 + $0x44] ss:$8 sps:$4 sm:$0xff]  }
  0x54   :  { %1903 = vmatpush3.msra.mxu1 %v267_v8  ;;  %v1958_v8 = vld [vmem:[#allocation11 + $0x40] ss:$8 sps:$4 sm:$0xff]   ;;  %v2012_v43 = vld [vmem:[#allocation11 + $0xb0] ss:$8 sps:$4 sm:$0xff]  }
  0x55   :  { %1904 = vmatprep.subr.mxu1 %v266_v9  ;;  %v2030_v59 = vld [vmem:[#allocation11 + $0x80] ss:$8 sps:$4 sm:$0xff]  }
  0x56   :  { %1905 = vmatpush3.msra.mxu1 %v266_v9  ;;  %1357 = vmatpush1.bf16.msra.mxu0 %v1946_v0  ;;  %v1963_v9 = vld [vmem:[#allocation11 + $0x144] ss:$8 sps:$4 sm:$0xff]   ;;  %v2033_v60 = vld [vmem:[#allocation11 + $0x180] ss:$8 sps:$4 sm:$0xff]  }
  0x57   :  { %1906 = vmatprep.subr.mxu1 %v265_v10  ;;  %1358 = vmatprep.subr.bf16.mxu0 %v1954_v3 }
  0x58   :  { %1907 = vmatpush3.msra.mxu1 %v265_v10  ;;  %v1961_v10 = vld [vmem:[#allocation11 + $0x140] ss:$8 sps:$4 sm:$0xff]  }
  0x59   :  { %1908 = vmatprep.subr.mxu1 %v264_v11 }
  0x5a   :  { %1909 = vmatpush3.msra.mxu1 %v264_v11  ;;  %1359 = vmatpush1.bf16.msra.mxu0 %v1952_v4  ;;  %v1966_v11 = vld [vmem:[#allocation11 + $0x34] ss:$8 sps:$4 sm:$0xff]  }
  0x5b   :  { %1910 = vmatprep.subr.mxu1 %v263_v12  ;;  %1360 = vmatprep.subr.bf16.mxu0 %v1960_v7 }
  0x5c   :  { %1911 = vmatpush3.msra.mxu1 %v263_v12  ;;  %v1964_v12 = vld [vmem:[#allocation11 + $0x30] ss:$8 sps:$4 sm:$0xff]  }
  0x5d   :  { %1912 = vmatprep.subr.mxu1 %v262_v13 }
  0x5e   :  { %1913 = vmatpush3.msra.mxu1 %v262_v13  ;;  %1361 = vmatpush1.bf16.msra.mxu0 %v1958_v8  ;;  %v1969_v13 = vld [vmem:[#allocation11 + $0x134] ss:$8 sps:$4 sm:$0xff]  }
  0x5f   :  { %1914 = vmatprep.subr.mxu1 %v261_v14  ;;  %1362 = vmatprep.subr.bf16.mxu0 %v1966_v11 }
  0x60   :  { %1915 = vmatpush3.msra.mxu1 %v261_v14  ;;  %v1967_v14 = vld [vmem:[#allocation11 + $0x130] ss:$8 sps:$4 sm:$0xff]  }
  0x61   :  { %1916 = vmatprep.subr.mxu1 %v260_v15 }
  0x62   :  { %1917 = vmatpush3.msra.mxu1 %v260_v15  ;;  %1363 = vmatpush1.bf16.msra.mxu0 %v1964_v12  ;;  %v1972_v15 = vld [vmem:[#allocation11 + $0x24] ss:$8 sps:$4 sm:$0xff]  }
  0x63   :  { %1918 = vmatprep.subr.mxu1 %v259_v16  ;;  %1364 = vmatprep.subr.bf16.mxu0 %v1972_v15 }
  0x64   :  { %1919 = vmatpush3.msra.mxu1 %v259_v16  ;;  %v1970_v16 = vld [vmem:[#allocation11 + $0x20] ss:$8 sps:$4 sm:$0xff]  }
  0x65   :  { %1920 = vmatprep.subr.mxu1 %v258_v17 }
  0x66   :  { %1921 = vmatpush3.msra.mxu1 %v258_v17  ;;  %v1975_v17 = vld [vmem:[#allocation11 + $0x124] ss:$8 sps:$4 sm:$0xff]   ;;  %1365 = vmatpush1.bf16.msra.mxu0 %v1970_v16 }
  0x67   :  { %1922 = vmatprep.subr.mxu1 %v257_v18 }
  0x68   :  { %1923 = vmatpush3.msra.mxu1 %v257_v18  ;;  %v1973_v18 = vld [vmem:[#allocation11 + $0x120] ss:$8 sps:$4 sm:$0xff]  }
  0x69   :  { %1924 = vmatprep.subr.mxu1 %v256_v19 }
  0x6a   :  { %1925 = vmatpush3.msra.mxu1 %v256_v19  ;;  %v1978_v19 = vld [vmem:[#allocation11 + $0x14] ss:$8 sps:$4 sm:$0xff]  }
  0x6b   :  { %1395 = vmatprep.subr.bf16.mxu1 %v1945_v61  ;;  %1366 = vmatprep.subr.bf16.mxu0 %v1978_v19  ;;  %v2038_v61 = vld [vmem:[#allocation11 + $0x274] ss:$8 sps:$4 sm:$0xff]  }
 0x10d   :  { %v1893_v20 = vpop.f32.mrf.mxu0 }
 0x10f   :  { %v199_v21 = vpop.f32.mrf.mxu0 }
 0x110   :  { %v210_v22 = vadd.f32 %v1893_v20, %v199_v21 }
 0x112   :  { %v211_v23 = vrot.slane %v210_v22, 4 }
 0x114   :  { %v212_v24 = vadd.f32 %v211_v23, %v210_v22  ;;  %v1979_v22 = vld [vmem:[#allocation11 + $0x110] ss:$8 sps:$4 sm:$0xff]   ;;  %v1984_v23 = vld [vmem:[#allocation11 + $0x4] ss:$8 sps:$4 sm:$0xff]  }
 0x116   :  { %v213_v25 = vrot.slane %v212_v24, 2 }
 0x118   :  { %v214_v26 = vadd.f32 %v213_v25, %v212_v24  ;;  %v1982_v24 = vld [vmem:[#allocation11] ss:$8 sps:$4 sm:$0xff]   ;;  %v1987_v25 = vld [vmem:[#allocation11 + $0x104] ss:$8 sps:$4 sm:$0xff]  }
 0x11a   :  { %v215_v27 = vrot.slane %v214_v26, 1 }
 0x11c   :  { %v216_v28 = vadd.f32 %v215_v27, %v214_v26  ;;  %v1985_v26 = vld [vmem:[#allocation11 + $0x100] ss:$8 sps:$4 sm:$0xff]   ;;  %v1990_v27 = vld [vmem:[#allocation11 + $0xf4] ss:$8 sps:$4 sm:$0xff]  }
 0x11e   :  { %v218_v29 = vmul.f32 0.0625, %v216_v28  ;;  %v1988_v28 = vld [vmem:[#allocation11 + $0xf0] ss:$8 sps:$4 sm:$0xff]  }
 0x120   :  { %v219_v30 = vsub.f32 %v199_v21, %v218_v29  ;;  %v220_v31 = vsub.f32 %v1893_v20, %v218_v29  ;;  %v1976_v20 = vld [vmem:[#allocation11 + $0x10] ss:$8 sps:$4 sm:$0xff]   ;;  %v1981_v21 = vld [vmem:[#allocation11 + $0x114] ss:$8 sps:$4 sm:$0xff]  }
 0x121   :  { %1367 = vmatpush1.bf16.msra.mxu0 %v1976_v20  ;;  %v1993_v29 = vld [vmem:[#allocation11 + $0x1f4] ss:$8 sps:$4 sm:$0xff]  }
 0x122   :  { %v221_v32 = vmul.f32 %v219_v30, %v219_v30  ;;  %v222_v33 = vmul.f32 %v220_v31, %v220_v31  ;;  %1368 = vmatprep.subr.bf16.mxu0 %v1984_v23 }
 0x124   :  { %v223_v34 = vadd.f32 %v222_v33, %v221_v32  ;;  %v1994_v32 = vld [vmem:[#allocation11 + $0xe0] ss:$8 sps:$4 sm:$0xff]   ;;  %v1999_v33 = vld [vmem:[#allocation11 + $0x1e4] ss:$8 sps:$4 sm:$0xff]  }
 0x125   :  { %1369 = vmatpush1.bf16.msra.mxu0 %v1982_v24 }
 0x126   :  { %v224_v35 = vrot.slane %v223_v34, 4  ;;  %1370 = vmatprep.subr.bf16.mxu0 %v1990_v27 }
 0x128   :  { %v225_v36 = vadd.f32 %v224_v35, %v223_v34  ;;  %v1997_v34 = vld [vmem:[#allocation11 + $0x1e0] ss:$8 sps:$4 sm:$0xff]   ;;  %v2002_v35 = vld [vmem:[#allocation11 + $0xd4] ss:$8 sps:$4 sm:$0xff]  }
 0x129   :  { %1371 = vmatpush2.bf16.msra.mxu0 %v1988_v28  ;;  %v1694_v28 = vld [vmem:[%s2412_s6] ss:$0 sm:$0xff] }
 0x12a   :  { %v226_v37 = vrot.slane %v225_v36, 2 }
 0x12c   :  { %v227_v38 = vadd.f32 %v226_v37, %v225_v36  ;;  %v2000_v36 = vld [vmem:[#allocation11 + $0xd0] ss:$8 sps:$4 sm:$0xff]   ;;  %v2005_v37 = vld [vmem:[#allocation11 + $0x1d4] ss:$8 sps:$4 sm:$0xff]  }
 0x12e   :  { %v228_v39 = vrot.slane %v227_v38, 1 }
 0x130   :  { %v229_v40 = vadd.f32 %v228_v39, %v227_v38  ;;  %v2003_v38 = vld [vmem:[#allocation11 + $0x1d0] ss:$8 sps:$4 sm:$0xff]   ;;  %v2008_v39 = vld [vmem:[#allocation11 + $0xc4] ss:$8 sps:$4 sm:$0xff]  }
 0x132   :  { %v230_v41 = vmul.f32 0.0625, %v229_v40  ;;  %v2006_v40 = vld [vmem:[#allocation11 + $0xc0] ss:$8 sps:$4 sm:$0xff]  }
 0x134   :  { %v231_v42 = vadd.f32 1e-05, %v230_v41  ;;  %v2011_v41 = vld [vmem:[#allocation11 + $0x1c4] ss:$8 sps:$4 sm:$0xff]  }
 0x136   :  { %2132 = vrsqrt.f32 %v231_v42  ;;  %v2009_v42 = vld [vmem:[#allocation11 + $0x1c0] ss:$8 sps:$4 sm:$0xff]  }
 0x143   :  { %v2133_v47 = vpop.eup %2132 }
 0x144   :  { %v233_v48 = vmul.f32 %v2133_v47, %v208_v45  ;;  %v2014_v45 = vld [vmem:[#allocation11 + $0xb4] ss:$8 sps:$4 sm:$0xff]   ;;  %v2015_v47 = vld [vmem:[#allocation11 + $0x1b0] ss:$8 sps:$4 sm:$0xff]  }
 0x146   :  { %v238_v49 = vrot.slane %v233_v48, %v2378_v46  ;;  %v2017_v48 = vld [vmem:[#allocation11 + $0x1b4] ss:$8 sps:$4 sm:$0xff]  }
 0x148   :  { %v240_v51 = vmul.f32 %v238_v49, %v219_v30  ;;  %v241_v52 = vmul.f32 %v238_v49, %v220_v31  ;;  %v1991_v30 = vld [vmem:[#allocation11 + $0x1f0] ss:$8 sps:$4 sm:$0xff]   ;;  %v1996_v31 = vld [vmem:[#allocation11 + $0xe4] ss:$8 sps:$4 sm:$0xff]  }
 0x149   :  { %1372 = vmatprep.subr.bf16.mxu0 %v1996_v31  ;;  %v2020_v49 = vld [vmem:[#allocation11 + $0xa4] ss:$8 sps:$4 sm:$0xff]  }
 0x14a   :  { %v248_v53 = vadd.f32 %v1693_v50, %v240_v51  ;;  %v249_v54 = vadd.f32 %v1693_v50, %v241_v52  ;;  %1373 = vmatpush2.bf16.msra.mxu0 %v1994_v32  ;;  %v2023_v50 = vld [vmem:[#allocation11 + $0x1a4] ss:$8 sps:$4 sm:$0xff]   ;;  %v2018_v51 = vld [vmem:[#allocation11 + $0xa0] ss:$8 sps:$4 sm:$0xff]   ;;  %v2026_v52 = vld [vmem:[#allocation11 + $0x94] ss:$8 sps:$4 sm:$0xff]  }
 0x14b   :  { %1374 = vmatprep.subr.bf16.mxu0 %v2002_v35 }
 0x14c   :  { %vm250_vm1 = vcmp.ge.f32.partialorder %v248_v53, 0.0  ;;  %v252_v55 = vmul.f32 0.2, %v248_v53  ;;  %vm251_vm2 = vcmp.ge.f32.partialorder %v249_v54, 0.0  ;;  %v253_v56 = vmul.f32 0.2, %v249_v54 }
 0x14e   :  { %v254_v57 = vsel %vm250_vm1, %v248_v53, %v252_v55  ;;  %v255_v58 = vsel %vm251_vm2, %v249_v54, %v253_v56  ;;  %1375 = vmatpush2.bf16.msra.mxu0 %v2000_v36  ;;  %v2021_v53 = vld [vmem:[#allocation11 + $0x1a0] ss:$8 sps:$4 sm:$0xff]   ;;  %v2029_v54 = vld [vmem:[#allocation11 + $0x194] ss:$8 sps:$4 sm:$0xff]   ;;  %v2024_v55 = vld [vmem:[#allocation11 + $0x90] ss:$8 sps:$4 sm:$0xff]  }
 0x14f   :  { %1926 = vmatprep.mubr.f32.mxu1 %v254_v57  ;;  %1376 = vmatprep.subr.bf16.mxu0 %v2008_v39  ;;  %v2032_v56 = vld [vmem:[#allocation11 + $0x84] ss:$8 sps:$4 sm:$0xff]   ;;  %v2027_v57 = vld [vmem:[#allocation11 + $0x190] ss:$8 sps:$4 sm:$0xff]  }
 0x150   :  { %1927 = vmatmul.mubr.f32.vlgmr.msra.gmra.mxu1 %v255_v58  ;;  %v2035_v58 = vld [vmem:[#allocation11 + $0x184] ss:$8 sps:$4 sm:$0xff]  }
 0x151   :  { %1396 = vmatpush1.bf16.msra.mxu1 %v1943_v62  ;;  %v2041_v62 = vld [vmem:[#allocation11 + $0x374] ss:$8 sps:$4 sm:$0xff]  }
 0x152   :  { %1397 = vmatprep.subr.bf16.mxu1 %v1951_v1  ;;  %1377 = vmatpush2.bf16.msra.mxu0 %v2006_v40 }
 0x153   :  { %1378 = vmatprep.subr.bf16.mxu0 %v2014_v45 }
 0x155   :  { %1398 = vmatpush1.bf16.msra.mxu1 %v1949_v2 }
 0x156   :  { %1399 = vmatprep.subr.bf16.mxu1 %v1957_v5  ;;  %1379 = vmatpush2.bf16.msra.mxu0 %v2012_v43 }
 0x157   :  { %1380 = vmatprep.subr.bf16.mxu0 %v2020_v49 }
 0x159   :  { %1400 = vmatpush1.bf16.msra.mxu1 %v1955_v6 }
 0x15a   :  { %1401 = vmatprep.subr.bf16.mxu1 %v1963_v9  ;;  %1381 = vmatpush2.bf16.msra.mxu0 %v2018_v51 }
 0x15b   :  { %1382 = vmatprep.subr.bf16.mxu0 %v2026_v52 }
 0x15d   :  { %1402 = vmatpush1.bf16.msra.mxu1 %v1961_v10 }
 0x15e   :  { %1403 = vmatprep.subr.bf16.mxu1 %v1969_v13  ;;  %1383 = vmatpush2.bf16.msra.mxu0 %v2024_v55 }
 0x15f   :  { %1384 = vmatprep.subr.bf16.mxu0 %v2032_v56 }
 0x161   :  { %1404 = vmatpush1.bf16.msra.mxu1 %v1967_v14 }
 0x162   :  { %1405 = vmatprep.subr.bf16.mxu1 %v1975_v17  ;;  %1385 = vmatpush2.bf16.msra.mxu0 %v2030_v59 }
 0x163   :  { %1436 = vmatprep.subr.bf16.mxu0 %v2038_v61 }
 0x165   :  { %1406 = vmatpush1.bf16.msra.mxu1 %v1973_v18 }
 0x166   :  { %1407 = vmatprep.subr.bf16.mxu1 %v1981_v21 }
 0x169   :  { %1408 = vmatpush1.bf16.msra.mxu1 %v1979_v22  ;;  %v347_v22 = vld [vmem:[%s2411_s5] sm:$0x1] }
 0x16a   :  { %1409 = vmatprep.subr.bf16.mxu1 %v1987_v25  ;;  %v2276_v25 = vmov 1966171168  }
 0x16d   :  { %1410 = vmatpush1.bf16.msra.mxu1 %v1985_v26  ;;  %v399_v26 = vunpack.c.l.s4 %v2276_v25  ;;  %v2056_v25 = vld [vmem:[#allocation11 + $0x244] ss:$8 sps:$4 sm:$0xff]  }
 0x16e   :  { %1411 = vmatprep.subr.bf16.mxu1 %v1993_v29 }
 0x16f   :  { %v400_v31 = vunpack.c.0.s8 %v399_v26  ;;  %v2051_v26 = vld [vmem:[#allocation11 + $0x350] ss:$8 sps:$4 sm:$0xff]  }
 0x171   :  { %1412 = vmatpush2.bf16.msra.mxu1 %v1991_v30  ;;  %v403_v36 = vsub.s32 %v400_v31, %v2372_v44  ;;  %v2065_v31 = vld [vmem:[#allocation11 + $0x334] ss:$8 sps:$4 sm:$0xff]  }
 0x172   :  { %1413 = vmatprep.subr.bf16.mxu1 %v1999_v33 }
 0x175   :  { %1414 = vmatpush2.bf16.msra.mxu1 %v1997_v34 }
 0x176   :  { %1415 = vmatprep.subr.bf16.mxu1 %v2005_v37 }
 0x179   :  { %1416 = vmatpush2.bf16.msra.mxu1 %v2003_v38 }
 0x17a   :  { %1417 = vmatprep.subr.bf16.mxu1 %v2011_v41 }
 0x17d   :  { %1418 = vmatpush2.bf16.msra.mxu1 %v2009_v42 }
 0x17e   :  { %1419 = vmatprep.subr.bf16.mxu1 %v2017_v48 }
 0x181   :  { %1420 = vmatpush2.bf16.msra.mxu1 %v2015_v47 }
 0x182   :  { %1421 = vmatprep.subr.bf16.mxu1 %v2023_v50 }
 0x185   :  { %1422 = vmatpush2.bf16.msra.mxu1 %v2021_v53 }
 0x186   :  { %1423 = vmatprep.subr.bf16.mxu1 %v2029_v54 }
 0x189   :  { %1424 = vmatpush2.bf16.msra.mxu1 %v2027_v57 }
 0x18a   :  { %1425 = vmatprep.subr.bf16.mxu1 %v2035_v58 }
 0x18d   :  { %1426 = vmatpush2.bf16.msra.mxu1 %v2033_v60 }
 0x18e   :  { %1477 = vmatprep.subr.bf16.mxu1 %v2041_v62 }
 0x210   :  { %v1928_v63 = vpop.f32.mrf.mxu1 }
 0x212   :  { %v338_v0 = vpop.f32.mrf.mxu1 }
 0x213   :  { %v349_v1 = vadd.f32 %v1928_v63, %v338_v0 }
 0x215   :  { %v350_v2 = vrot.slane %v349_v1, 4 }
 0x217   :  { %v351_v3 = vadd.f32 %v350_v2, %v349_v1 }
 0x219   :  { %v352_v4 = vrot.slane %v351_v3, 2 }
 0x21b   :  { %v353_v5 = vadd.f32 %v352_v4, %v351_v3 }
 0x21d   :  { %v354_v6 = vrot.slane %v353_v5, 1 }
 0x21f   :  { %v355_v7 = vadd.f32 %v354_v6, %v353_v5 }
 0x221   :  { %v356_v8 = vmul.f32 0.0625, %v355_v7 }
 0x223   :  { %v357_v9 = vsub.f32 %v338_v0, %v356_v8  ;;  %v358_v10 = vsub.f32 %v1928_v63, %v356_v8 }
 0x225   :  { %v359_v11 = vmul.f32 %v357_v9, %v357_v9  ;;  %v360_v12 = vmul.f32 %v358_v10, %v358_v10 }
 0x227   :  { %v361_v13 = vadd.f32 %v360_v12, %v359_v11  ;;  %v2036_v12 = vld [vmem:[#allocation11 + $0x270] ss:$8 sps:$4 sm:$0xff]  }
 0x229   :  { %v362_v14 = vrot.slane %v361_v13, 4 }
 0x22b   :  { %v363_v15 = vadd.f32 %v362_v14, %v361_v13 }
 0x22d   :  { %v364_v16 = vrot.slane %v363_v15, 2 }
 0x22f   :  { %v365_v17 = vadd.f32 %v364_v16, %v363_v15  ;;  %v2039_v15 = vld [vmem:[#allocation11 + $0x370] ss:$8 sps:$4 sm:$0xff]   ;;  %v2044_v16 = vld [vmem:[#allocation11 + $0x264] ss:$8 sps:$4 sm:$0xff]  }
 0x231   :  { %v366_v18 = vrot.slane %v365_v17, 1 }
 0x233   :  { %v367_v19 = vadd.f32 %v366_v18, %v365_v17  ;;  %v2047_v18 = vld [vmem:[#allocation11 + $0x364] ss:$8 sps:$4 sm:$0xff]  }
 0x235   :  { %v368_v20 = vmul.f32 0.0625, %v367_v19  ;;  %v2042_v19 = vld [vmem:[#allocation11 + $0x260] ss:$8 sps:$4 sm:$0xff]  }
 0x237   :  { %v369_v21 = vadd.f32 1e-05, %v368_v20 }
 0x239   :  { %2134 = vrsqrt.f32 %v369_v21  ;;  %v2050_v21 = vld [vmem:[#allocation11 + $0x254] ss:$8 sps:$4 sm:$0xff]  }
 0x246   :  { %v2135_v23 = vpop.eup %2134 }
 0x247   :  { %v371_v24 = vmul.f32 %v2135_v23, %v347_v22  ;;  %v2045_v22 = vld [vmem:[#allocation11 + $0x360] ss:$8 sps:$4 sm:$0xff]   ;;  %v2053_v23 = vld [vmem:[#allocation11 + $0x354] ss:$8 sps:$4 sm:$0xff]  }
 0x249   :  { %v376_v27 = vrot.slane %v371_v24, %v2378_v46  ;;  %v2048_v24 = vld [vmem:[#allocation11 + $0x250] ss:$8 sps:$4 sm:$0xff]  }
 0x24b   :  { %v378_v29 = vmul.f32 %v376_v27, %v357_v9  ;;  %v379_v30 = vmul.f32 %v376_v27, %v358_v10  ;;  %v2059_v27 = vld [vmem:[#allocation11 + $0x344] ss:$8 sps:$4 sm:$0xff]  }
 0x24d   :  { %v386_v32 = vadd.f32 %v1694_v28, %v378_v29  ;;  %v387_v33 = vadd.f32 %v1694_v28, %v379_v30  ;;  %v2054_v28 = vld [vmem:[#allocation11 + $0x240] ss:$8 sps:$4 sm:$0xff]   ;;  %v2062_v29 = vld [vmem:[#allocation11 + $0x234] ss:$8 sps:$4 sm:$0xff]  }
 0x24e   :  { %v2057_v30 = vld [vmem:[#allocation11 + $0x340] ss:$8 sps:$4 sm:$0xff]  }
 0x24f   :  { %vm388_vm3 = vcmp.ge.f32.partialorder %v386_v32, 0.0  ;;  %vm389_vm4 = vcmp.ge.f32.partialorder %v387_v33, 0.0  ;;  %v390_v34 = vmul.f32 0.2, %v386_v32  ;;  %v391_v35 = vmul.f32 0.2, %v387_v33 }
 0x251   :  { %v392_v37 = vsel %vm388_vm3, %v386_v32, %v390_v34  ;;  %v393_v38 = vsel %vm389_vm4, %v387_v33, %v391_v35  ;;  %v2060_v32 = vld [vmem:[#allocation11 + $0x230] ss:$8 sps:$4 sm:$0xff]   ;;  %v2068_v33 = vld [vmem:[#allocation11 + $0x224] ss:$8 sps:$4 sm:$0xff]  }
 0x252   :  { %v396_v39 = vcombine.low %v392_v37, %v393_v38  ;;  %v397_v40 = vcombine.high %v392_v37, %v393_v38  ;;  %v2063_v34 = vld [vmem:[#allocation11 + $0x330] ss:$8 sps:$4 sm:$0xff]   ;;  %v2071_v35 = vld [vmem:[#allocation11 + $0x324] ss:$8 sps:$4 sm:$0xff]   ;;  %v2074_v37 = vld [vmem:[#allocation11 + $0x214] ss:$8 sps:$4 sm:$0xff]  }
 0x253   :  { %v2069_v38 = vld [vmem:[#allocation11 + $0x320] ss:$8 sps:$4 sm:$0xff]  }
 0x254   :  { %v404_v41 = vrot.slane %v396_v39, %v403_v36  ;;  %v411_v42 = vrot.slane %v397_v40, %v403_v36  ;;  %v2077_v39 = vld [vmem:[#allocation11 + $0x314] ss:$8 sps:$4 sm:$0xff]   ;;  %v2072_v40 = vld [vmem:[#allocation11 + $0x210] ss:$8 sps:$4 sm:$0xff]  }
 0x256   :  { %v412_v43 = vcombine.high %v404_v41, %v404_v41  ;;  %v413_v45 = vcombine.high %v411_v42, %v411_v42  ;;  %v420_v47 = vrot.slane %v404_v41, %v403_v36  ;;  %v427_v48 = vrot.slane %v411_v42, %v403_v36  ;;  %v2080_v41 = vld [vmem:[#allocation11 + $0x204] ss:$8 sps:$4 sm:$0xff]   ;;  %v2075_v42 = vld [vmem:[#allocation11 + $0x310] ss:$8 sps:$4 sm:$0xff]  }
 0x258   :  { %v434_v49 = vrot.slane %v412_v43, %v403_v36  ;;  %v441_v50 = vrot.slane %v413_v45, %v403_v36  ;;  %v442_v51 = vcombine.high %v420_v47, %v420_v47  ;;  %v443_v52 = vcombine.high %v427_v48, %v427_v48  ;;  %v2083_v43 = vld [vmem:[#allocation11 + $0x304] ss:$8 sps:$4 sm:$0xff]   ;;  %v2078_v45 = vld [vmem:[#allocation11 + $0x200] ss:$8 sps:$4 sm:$0xff]  }
 0x25a   :  { %v444_v53 = vcombine.high %v434_v49, %v434_v49  ;;  %v445_v54 = vcombine.high %v441_v50, %v441_v50  ;;  %v1695_v55 = vpack.c.bf16 %v434_v49, %v420_v47  ;;  %v1697_v56 = vpack.c.bf16 %v441_v50, %v427_v48  ;;  %v2086_v47 = vld [vmem:[#allocation11 + $0x2f4] ss:$8 sps:$4 sm:$0xff]   ;;  %v2081_v48 = vld [vmem:[#allocation11 + $0x300] ss:$8 sps:$4 sm:$0xff]   ;;  %v2084_v50 = vld [vmem:[#allocation11 + $0x2f0] ss:$8 sps:$4 sm:$0xff]  }
 0x25b   :  { %v2089_v49 = vld [vmem:[#allocation11 + $0x3f4] ss:$8 sps:$4 sm:$0xff]  }
 0x25c   :  { %v1696_v57 = vpack.c.bf16 %v444_v53, %v442_v51  ;;  %v1698_v58 = vpack.c.bf16 %v445_v54, %v443_v52  ;;  %v480_v59 = vrot.slane %v1695_v55, %v403_v36  ;;  %v494_v61 = vrot.slane %v1697_v56, %v403_v36  ;;  %v2092_v51 = vld [vmem:[#allocation11 + $0x2e4] ss:$8 sps:$4 sm:$0xff]   ;;  %v2087_v52 = vld [vmem:[#allocation11 + $0x3f0] ss:$8 sps:$4 sm:$0xff]   ;;  %v2090_v54 = vld [vmem:[#allocation11 + $0x2e0] ss:$8 sps:$4 sm:$0xff]  }
 0x25d   :  { %v2095_v53 = vld [vmem:[#allocation11 + $0x3e4] ss:$8 sps:$4 sm:$0xff]   ;;  %v2098_v55 = vld [vmem:[#allocation11 + $0x2d4] ss:$8 sps:$4 sm:$0xff]   ;;  %v2093_v56 = vld [vmem:[#allocation11 + $0x3e0] ss:$8 sps:$4 sm:$0xff]  }
 0x25e   :  { %v487_v60 = vrot.slane %v1696_v57, %v403_v36  ;;  %v501_v62 = vrot.slane %v1698_v58, %v403_v36  ;;  %v2101_v57 = vld [vmem:[#allocation11 + $0x3d4] ss:$8 sps:$4 sm:$0xff]   ;;  %v2096_v58 = vld [vmem:[#allocation11 + $0x2d0] ss:$8 sps:$4 sm:$0xff]  }
 0x260   :  { %v502_v63 = vcombine.low %v480_v59, %v487_v60  ;;  %v503_v0 = vcombine.low %v494_v61, %v501_v62  ;;  %v2104_v59 = vld [vmem:[#allocation11 + $0x2c4] ss:$8 sps:$4 sm:$0xff]   ;;  %v2099_v60 = vld [vmem:[#allocation11 + $0x3d0] ss:$8 sps:$4 sm:$0xff]   ;;  %v2102_v62 = vld [vmem:[#allocation11 + $0x2c0] ss:$8 sps:$4 sm:$0xff]  }
 0x261   :  { %v2107_v61 = vld [vmem:[#allocation11 + $0x3c4] ss:$8 sps:$4 sm:$0xff]  }
 0x262   :  { %v510_v1 = vrot.slane %v502_v63, %v403_v36  ;;  %v517_v2 = vrot.slane %v503_v0, %v403_v36  ;;  %v2110_v63 = vld [vmem:[#allocation11 + $0x2b4] ss:$8 sps:$4 sm:$0xff]   ;;  %v2105_v0 = vld [vmem:[#allocation11 + $0x3c0] ss:$8 sps:$4 sm:$0xff]  }
 0x264   :  { %v518_v3 = vcombine.low %v510_v1, %v517_v2  ;;  %v1829_v4 = vcombine.low %v517_v2, %v517_v2  ;;  %v2113_v1 = vld [vmem:[#allocation11 + $0x3b4] ss:$8 sps:$4 sm:$0xff]   ;;  %v2108_v2 = vld [vmem:[#allocation11 + $0x2b0] ss:$8 sps:$4 sm:$0xff]  }
 0x266   :  { %v664_v5 = vrot.slane %v518_v3, %v403_v36  ;;  %v671_v6 = vrot.slane %v1829_v4, %v403_v36  ;;  %v2116_v3 = vld [vmem:[#allocation11 + $0x2a4] ss:$8 sps:$4 sm:$0xff]   ;;  %v2111_v4 = vld [vmem:[#allocation11 + $0x3b0] ss:$8 sps:$4 sm:$0xff]  }
 0x268   :  { %v672_v7 = vcombine.high %v664_v5, %v664_v5  ;;  %v673_v8 = vcombine.high %v671_v6, %v671_v6  ;;  %v2389_v9 = vrot.slane %v671_v6, %v403_v36  ;;  %v680_v10 = vrot.slane %v664_v5, %v403_v36  ;;  %v2119_v5 = vld [vmem:[#allocation11 + $0x3a4] ss:$8 sps:$4 sm:$0xff]   ;;  %v2114_v6 = vld [vmem:[#allocation11 + $0x2a0] ss:$8 sps:$4 sm:$0xff]  }
 0x26a   :  { %v694_v11 = vrot.slane %v672_v7, %v403_v36  ;;  %v701_v13 = vrot.slane %v673_v8, %v403_v36  ;;  %v702_v17 = vcombine.high %v680_v10, %v680_v10  ;;  %v2066_v36 = vld [vmem:[#allocation11 + $0x220] ss:$8 sps:$4 sm:$0xff]   ;;  %v2122_v7 = vld [vmem:[#allocation11 + $0x294] ss:$8 sps:$4 sm:$0xff]  }
 0x26b   :  { %v2117_v8 = vld [vmem:[#allocation11 + $0x3a0] ss:$8 sps:$4 sm:$0xff]  }
 0x26c   :  { %1386 = vmatprep.mubr.bf16.mxu0 %v694_v11  ;;  %v704_v14 = vcombine.high %v694_v11, %v694_v11  ;;  %v705_v20 = vcombine.high %v701_v13, %v701_v13  ;;  %v2120_v11 = vld [vmem:[#allocation11 + $0x290] ss:$8 sps:$4 sm:$0xff]  }
 0x26d   :  { %1387 = vmatmul.mubr.bf16.vlgmr.msra.gmra.mxu0 %v680_v10  ;;  %v2125_v10 = vld [vmem:[#allocation11 + $0x394] ss:$8 sps:$4 sm:$0xff]  }
 0x26e   :  { %1437 = vmatpush1.bf16.msra.mxu0 %v2036_v12  ;;  %1427 = vmatprep.mubr.bf16.mxu1 %v704_v14  ;;  %v2128_v12 = vld [vmem:[#allocation11 + $0x284] ss:$8 sps:$4 sm:$0xff]  }
 0x26f   :  { %1468 = vmatprep.mubr.bf16.mxu0 %v701_v13  ;;  %1428 = vmatmul.mubr.bf16.vlgmr.msra.gmra.mxu1 %v702_v17  ;;  %v2123_v13 = vld [vmem:[#allocation11 + $0x390] ss:$8 sps:$4 sm:$0xff]   ;;  %v2131_v14 = vld [vmem:[#allocation11 + $0x384] ss:$8 sps:$4 sm:$0xff]   ;;  %v703_v17 = vcombine.high %v2389_v9, %v2389_v9 }
 0x270   :  { %1478 = vmatpush1.bf16.msra.mxu1 %v2039_v15  ;;  %1438 = vmatprep.subr.bf16.mxu0 %v2044_v16  ;;  %v2126_v15 = vld [vmem:[#allocation11 + $0x280] ss:$8 sps:$4 sm:$0xff]  }
 0x271   :  { %1509 = vmatprep.mubr.bf16.mxu1 %v705_v20  ;;  %1479 = vmatprep.subr.bf16.mxu1 %v2047_v18  ;;  %v2129_v16 = vld [vmem:[#allocation11 + $0x380] ss:$8 sps:$4 sm:$0xff]   ;;  %v2277_v18 = vmov 0.0   ;;  %v1576_v20 = vld [vmem:[#allocation12 + $0x78] sm:$0xff] }
 0x272   :  { %1439 = vmatpush1.bf16.msra.mxu0 %v2042_v19  ;;  %521 = vst [vmem:[#allocation3] sm:$0xf] %v2277_v18  ;;  %v1592_v19 = vld [vmem:[#allocation12 + $0xf8] sm:$0xff] }
 0x273   :  { %1440 = vmatprep.subr.bf16.mxu0 %v2050_v21  ;;  %v1591_v21 = vld [vmem:[#allocation12 + $0xf0] sm:$0xff] }
 0x274   :  { %1480 = vmatpush1.bf16.msra.mxu1 %v2045_v22  ;;  %v1575_v22 = vld [vmem:[#allocation12 + $0x70] sm:$0xff] }
 0x275   :  { %1481 = vmatprep.subr.bf16.mxu1 %v2053_v23  ;;  %v1590_v23 = vld [vmem:[#allocation12 + $0xe8] sm:$0xff] }
 0x276   :  { %1441 = vmatpush1.bf16.msra.mxu0 %v2048_v24  ;;  %v1574_v24 = vld [vmem:[#allocation12 + $0x68] sm:$0xff] }
 0x277   :  { %1442 = vmatprep.subr.bf16.mxu0 %v2056_v25  ;;  %v1589_v25 = vld [vmem:[#allocation12 + $0xe0] sm:$0xff] }
 0x278   :  { %1482 = vmatpush1.bf16.msra.mxu1 %v2051_v26  ;;  %v1573_v26 = vld [vmem:[#allocation12 + $0x60] sm:$0xff] }
 0x279   :  { %1483 = vmatprep.subr.bf16.mxu1 %v2059_v27  ;;  %v1572_v27 = vld [vmem:[#allocation12 + $0x58] sm:$0xff] }
 0x27a   :  { %1443 = vmatpush1.bf16.msra.mxu0 %v2054_v28  ;;  %v1587_v28 = vld [vmem:[#allocation12 + $0xd0] sm:$0xff] }
 0x27b   :  { %1444 = vmatprep.subr.bf16.mxu0 %v2062_v29  ;;  %v1571_v29 = vld [vmem:[#allocation12 + $0x50] sm:$0xff] }
 0x27c   :  { %1484 = vmatpush1.bf16.msra.mxu1 %v2057_v30  ;;  %v1586_v30 = vld [vmem:[#allocation12 + $0xc8] sm:$0xff] }
 0x27d   :  { %1485 = vmatprep.subr.bf16.mxu1 %v2065_v31  ;;  %v1570_v31 = vld [vmem:[#allocation12 + $0x48] sm:$0xff] }
 0x27e   :  { %1445 = vmatpush1.bf16.msra.mxu0 %v2060_v32  ;;  %v1585_v32 = vld [vmem:[#allocation12 + $0xc0] sm:$0xff] }
 0x27f   :  { %1446 = vmatprep.subr.bf16.mxu0 %v2068_v33  ;;  %v1569_v33 = vld [vmem:[#allocation12 + $0x40] sm:$0xff] }
 0x280   :  { %1486 = vmatpush1.bf16.msra.mxu1 %v2063_v34  ;;  %v1584_v34 = vld [vmem:[#allocation12 + $0xb8] sm:$0xff] }
 0x281   :  { %1487 = vmatprep.subr.bf16.mxu1 %v2071_v35  ;;  %v1568_v35 = vld [vmem:[#allocation12 + $0x38] sm:$0xff] }
 0x282   :  { %1447 = vmatpush1.bf16.msra.mxu0 %v2066_v36  ;;  %v1583_v36 = vld [vmem:[#allocation12 + $0xb0] sm:$0xff] }
 0x283   :  { %1448 = vmatprep.subr.bf16.mxu0 %v2074_v37  ;;  %v1567_v37 = vld [vmem:[#allocation12 + $0x30] sm:$0xff] }
 0x284   :  { %1488 = vmatpush1.bf16.msra.mxu1 %v2069_v38  ;;  %v1582_v38 = vld [vmem:[#allocation12 + $0xa8] sm:$0xff] }
 0x285   :  { %1489 = vmatprep.subr.bf16.mxu1 %v2077_v39  ;;  %v1566_v39 = vld [vmem:[#allocation12 + $0x28] sm:$0xff] }
 0x286   :  { %1449 = vmatpush1.bf16.msra.mxu0 %v2072_v40  ;;  %v1581_v40 = vld [vmem:[#allocation12 + $0xa0] sm:$0xff] }
 0x287   :  { %1450 = vmatprep.subr.bf16.mxu0 %v2080_v41  ;;  %v1565_v41 = vld [vmem:[#allocation12 + $0x20] sm:$0xff] }
 0x288   :  { %1490 = vmatpush1.bf16.msra.mxu1 %v2075_v42  ;;  %v1580_v42 = vld [vmem:[#allocation12 + $0x98] sm:$0xff] }
 0x289   :  { %1491 = vmatprep.subr.bf16.mxu1 %v2083_v43  ;;  %v1564_v43 = vld [vmem:[#allocation12 + $0x18] sm:$0xff] }
 0x28a   :  { %1451 = vmatpush1.bf16.msra.mxu0 %v2078_v45  ;;  %v1579_v45 = vld [vmem:[#allocation12 + $0x90] sm:$0xff] }
 0x28b   :  { %1452 = vmatprep.subr.bf16.mxu0 %v2086_v47  ;;  %v1563_v47 = vld [vmem:[#allocation12 + $0x10] sm:$0xff] }
 0x28c   :  { %1492 = vmatpush1.bf16.msra.mxu1 %v2081_v48  ;;  %v1578_v48 = vld [vmem:[#allocation12 + $0x88] sm:$0xff] }
 0x28d   :  { %1493 = vmatprep.subr.bf16.mxu1 %v2089_v49  ;;  %v1562_v49 = vld [vmem:[#allocation12 + $0x8] sm:$0xff] }
 0x28e   :  { %1453 = vmatpush2.bf16.msra.mxu0 %v2084_v50  ;;  %v1577_v50 = vld [vmem:[#allocation12 + $0x80] sm:$0xff] }
 0x28f   :  { %1454 = vmatprep.subr.bf16.mxu0 %v2092_v51  ;;  %v1561_v51 = vld [vmem:[#allocation12] sm:$0xff] }
 0x290   :  { %1494 = vmatpush2.bf16.msra.mxu1 %v2087_v52 }
 0x291   :  { %1495 = vmatprep.subr.bf16.mxu1 %v2095_v53 }
 0x292   :  { %1455 = vmatpush2.bf16.msra.mxu0 %v2090_v54 }
 0x293   :  { %1456 = vmatprep.subr.bf16.mxu0 %v2098_v55 }
 0x294   :  { %1496 = vmatpush2.bf16.msra.mxu1 %v2093_v56 }
 0x295   :  { %1497 = vmatprep.subr.bf16.mxu1 %v2101_v57 }
 0x296   :  { %1457 = vmatpush2.bf16.msra.mxu0 %v2096_v58 }
 0x297   :  { %1458 = vmatprep.subr.bf16.mxu0 %v2104_v59 }
 0x298   :  { %1498 = vmatpush2.bf16.msra.mxu1 %v2099_v60  ;;  %v2278_v60 = vmov 1983009808  }
 0x299   :  { %1499 = vmatprep.subr.bf16.mxu1 %v2107_v61  ;;  %v1522_v61 = vunpack.c.l.s4 %v2278_v60 }
 0x29a   :  { %1459 = vmatpush2.bf16.msra.mxu0 %v2102_v62 }
 0x29b   :  { %1460 = vmatprep.subr.bf16.mxu0 %v2110_v63 }
 0x29c   :  { %1500 = vmatpush2.bf16.msra.mxu1 %v2105_v0 }
 0x29d   :  { %1501 = vmatprep.subr.bf16.mxu1 %v2113_v1 }
 0x29e   :  { %1461 = vmatpush2.bf16.msra.mxu0 %v2108_v2  ;;  %v1523_v2 = vunpack.c.0.s8 %v1522_v61 }
 0x29f   :  { %1462 = vmatprep.subr.bf16.mxu0 %v2116_v3 }
 0x2a0   :  { %1502 = vmatpush2.bf16.msra.mxu1 %v2111_v4 }
 0x2a1   :  { %1503 = vmatprep.subr.bf16.mxu1 %v2119_v5 }
 0x2a2   :  { %1463 = vmatpush2.bf16.msra.mxu0 %v2114_v6 }
 0x2a3   :  { %1464 = vmatprep.subr.bf16.mxu0 %v2122_v7 }
 0x2a4   :  { %1504 = vmatpush2.bf16.msra.mxu1 %v2117_v8  ;;  %v1543_v8 = vsub.s32 1, %v2372_v44 }
 0x2a5   :  { %1505 = vmatprep.subr.bf16.mxu1 %v2125_v10 }
 0x2a6   :  { %1465 = vmatpush2.bf16.msra.mxu0 %v2120_v11 }
 0x2a7   :  { %1466 = vmatprep.subr.bf16.mxu0 %v2128_v12  ;;  %v1526_v12 = vsub.s32 %v1523_v2, %v2372_v44 }
 0x2a8   :  { %1506 = vmatpush2.bf16.msra.mxu1 %v2123_v13  ;;  %v1535_v13 = vld [vmem:[%s2414_s8] sm:$0x3] }
 0x2a9   :  { %1507 = vmatprep.subr.bf16.mxu1 %v2131_v14 }
 0x2aa   :  { %1467 = vmatpush2.bf16.msra.mxu0 %v2126_v15 }
 0x2ab   :  { %1852 = vmatprep.subr.mxu0 %v1592_v19  ;;  %v1540_v19 = vrot.slane %v1535_v13, %v2378_v46  ;;  %v1828_v46 = vld [vmem:[%s2416_s10] ss:$0 sm:$0xff] }
 0x2ac   :  { %1508 = vmatpush2.bf16.msra.mxu1 %v2129_v16 }
 0x2ad   :  { %1469 = vmatmul.mubr.bf16.vlgmr.msra.gmra.mxu0 %v2389_v9  ;;  %v1588_v9 = vld [vmem:[#allocation12 + $0xd8] sm:$0xff] }
 0x2ae   :  { %1853 = vmatpush3.msra.mxu0 %v1576_v20  ;;  %v1544_v20 = vrot.slane %v1535_v13, %v1543_v8 }
 0x2af   :  { %1510 = vmatmul.mubr.bf16.vlgmr.msra.gmra.mxu1 %v703_v17  ;;  %1854 = vmatprep.subr.mxu0 %v1591_v21  ;;  %v527_v17 = vld [vmem:[#allocation3] sm:$0xf] }
 0x2b0   :  { %1855 = vmatpush3.msra.mxu0 %v1575_v22 }
 0x2b1   :  { %1856 = vmatprep.subr.mxu0 %v1590_v23  ;;  %v1545_v23 = vcombine.low %v1540_v19, %v1544_v20 }
 0x2b2   :  { %1857 = vmatpush3.msra.mxu0 %v1574_v24 }
 0x2b3   :  { %1858 = vmatprep.subr.mxu0 %v1589_v25  ;;  %v1552_v24 = vrot.slane %v1545_v23, %v1526_v12 }
 0x2b4   :  { %1859 = vmatpush3.msra.mxu0 %v1573_v26 }
 0x2b5   :  { %1860 = vmatprep.subr.mxu0 %v1588_v9 }
 0x2b6   :  { %1861 = vmatpush3.msra.mxu0 %v1572_v27 }
 0x2b7   :  { %1862 = vmatprep.subr.mxu0 %v1587_v28 }
 0x2b8   :  { %1863 = vmatpush3.msra.mxu0 %v1571_v29 }
 0x2b9   :  { %1864 = vmatprep.subr.mxu0 %v1586_v30 }
 0x2ba   :  { %1865 = vmatpush3.msra.mxu0 %v1570_v31 }
 0x2bb   :  { %1866 = vmatprep.subr.mxu0 %v1585_v32 }
 0x2bc   :  { %1867 = vmatpush3.msra.mxu0 %v1569_v33 }
 0x2bd   :  { %1868 = vmatprep.subr.mxu0 %v1584_v34 }
 0x2be   :  { %1869 = vmatpush3.msra.mxu0 %v1568_v35 }
 0x2bf   :  { %1870 = vmatprep.subr.mxu0 %v1583_v36 }
 0x2c0   :  { %1871 = vmatpush3.msra.mxu0 %v1567_v37 }
 0x2c1   :  { %1872 = vmatprep.subr.mxu0 %v1582_v38 }
 0x2c2   :  { %1873 = vmatpush3.msra.mxu0 %v1566_v39 }
 0x2c3   :  { %1874 = vmatprep.subr.mxu0 %v1581_v40 }
 0x2c4   :  { %1875 = vmatpush3.msra.mxu0 %v1565_v41 }
 0x2c5   :  { %1876 = vmatprep.subr.mxu0 %v1580_v42 }
 0x2c6   :  { %1877 = vmatpush3.msra.mxu0 %v1564_v43 }
 0x2c7   :  { %1878 = vmatprep.subr.mxu0 %v1579_v45 }
 0x2c8   :  { %1879 = vmatpush3.msra.mxu0 %v1563_v47 }
 0x2c9   :  { %1880 = vmatprep.subr.mxu0 %v1578_v48 }
 0x2ca   :  { %1881 = vmatpush3.msra.mxu0 %v1562_v49 }
 0x2cb   :  { %1882 = vmatprep.subr.mxu0 %v1577_v50 }
 0x2cc   :  { %1883 = vmatpush3.msra.mxu0 %v1561_v51 }
 0x32d   :  { %v1388_v52 = vpop.f32.mrf.mxu0 }
 0x32f   :  { %v1390_v53 = vpop.f32.mrf.mxu0  ;;  %v1429_v54 = vpop.f32.mrf.mxu1 }
 0x330   :  { %v1430_v62 = vadd.f32 %v1429_v54, %v1388_v52 }
 0x331   :  { %v1392_v55 = vpop.f32.mrf.mxu0  ;;  %v1431_v56 = vpop.f32.mrf.mxu1 }
 0x332   :  { %v1432_v0 = vadd.f32 %v1431_v56, %v1390_v53 }
 0x333   :  { %v1393_v57 = vpop.f32.mrf.mxu0  ;;  %v1433_v58 = vpop.f32.mrf.mxu1 }
 0x335   :  { %v1434_v59 = vpop.f32.mrf.mxu1 }
 0x36d   :  { %v1470_v63 = vpop.f32.mrf.mxu0 }
 0x36e   :  { %v1471_v1 = vadd.f32 %v1470_v63, %v1430_v62 }
 0x36f   :  { %v1472_v3 = vpop.f32.mrf.mxu0  ;;  %v1511_v4 = vpop.f32.mrf.mxu1 }
 0x370   :  { %v1473_v5 = vadd.f32 %v1472_v3, %v1432_v0  ;;  %v1512_v10 = vadd.f32 %v1511_v4, %v1471_v1 }
 0x371   :  { %v1474_v6 = vpop.f32.mrf.mxu0  ;;  %v1513_v7 = vpop.f32.mrf.mxu1 }
 0x372   :  { %v1514_v11 = vadd.f32 %v1513_v7, %v1473_v5 }
 0x373   :  { %v1475_v14 = vpop.f32.mrf.mxu0  ;;  %v1515_v15 = vpop.f32.mrf.mxu1 }
 0x374   :  { %v1520_v16 = vcombine.low %v1512_v10, %v1514_v11 }
 0x375   :  { %v1516_v18 = vpop.f32.mrf.mxu1 }
 0x376   :  { %v1527_v21 = vrot.slane %v1520_v16, %v1526_v12 }
 0x378   :  { %v1529_v22 = vadd.f32 %v1527_v21, %v527_v17 }
 0x37a   :  { %1530 = vst [vmem:[#allocation3] sm:$0xf] %v1529_v22 }
 0x381   :  { %v1534_v25 = vld [vmem:[#allocation3] sm:$0xf] }
 0x382   :  { %v1554_v26 = vadd.f32 %v1552_v24, %v1534_v25 }
 0x384   :  { %v1827_v44 = vmul.f32 -1.442695, %v1554_v26 }
 0x386   :  { %2136 = vpow2.f32 %v1827_v44 }
 0x393   :  { %v2137_v9 = vpop.eup %2136 }
 0x394   :  { %v1558_v27 = vadd.f32 1.0, %v2137_v9 }
 0x396   :  { %2138 = vrcp.f32 %v1558_v27 }
 0x3a3   :  { %v2139_v28 = vpop.eup %2138 }
 0x3a4   :  { %v1607_v29 = vrot.slane %v2139_v28, %v1526_v12 }
 0x3a6   :  { %v1608_v30 = vcombine.high %v1607_v29, %v1607_v29 }
 0x3a8   :  { %1675 = vmatprep.mubr.f32.mxu0 %v1608_v30 }
 0x3a9   :  { %1676 = vmatmul.mubr.f32.vlgmr.msra.gmra.mxu0 %v1607_v29 }
 0x469   :  { %v1884_v31 = vpop.f32.mrf.mxu0 }
 0x46b   :  { %v1885_v32 = vpop.f32.mrf.mxu0 }
 0x46c   :  { %v1886_v33 = vadd.f32 %v1885_v32, %v1884_v31 }
 0x46e   :  { %v1678_v34 = vadd.f32 %v1886_v33, %v1828_v46 }
 0x470   :  { %1681 = vst [vmem:[%s2417_s11] sm:$0x3] %v1678_v34 }
 0x471   :  { %1686 = vsyncpa [#allocation5], 1 }
 0x472   :  { %1687 = vsyncpa [#allocation7], 1 }
 0x473   :  { %1688 = vsyncpa [#allocation10], 1 }
 0x474   :  { %1689 = vsyncpa [#allocation13], 1 }

</bundles_post_ra>
